<compile_context>
chip_gen: v7x
topology: tpu7x:2x2x1
jax: 0.10.0
libtpu: 0.0.40
codegen_flags: <defaults>
</compile_context>

<pallas_src>
import jax
import jax.numpy as jnp
from jax.experimental import pallas as pl
from jax.experimental.pallas import tpu as pltpu


# ---------------------------------------------------------------------------
# Pallas kernel: fused cross-entropy + argmax + accuracy (one launch)
# ---------------------------------------------------------------------------
def _fused_loss_acc_kernel(logits_ref, labels_ref, out_ref):
    """Fused cross-entropy + argmax + accuracy.

    logits_ref: (B, C)  logits; class axis is the lane (last) axis.
    labels_ref: (B, 1)  int32 labels (broadcast along lanes in-kernel).
    out_ref:    (2,)    f32 SMEM -> [mean NLL, mean(argmax(logits) == label)].
    """
    logits = logits_ref[...].astype(jnp.float32)                 # (B, C) f32 math
    labels = labels_ref[...]                                     # (B, 1) int32
    B, C = logits.shape
    inv_b = 1.0 / B                                              # static constant

    # class index along the lane (class) axis
    class_ids = jax.lax.broadcasted_iota(jnp.int32, (B, C), 1)   # (B, C)

    # --- numerically stable log-sum-exp over the class (lane) axis ----------
    m = jnp.max(logits, axis=-1, keepdims=True)                  # (B, 1)
    lse = m + jnp.log(jnp.sum(jnp.exp(logits - m), axis=-1, keepdims=True))

    # --- gather logits[i, label[i]] via a one-hot mask (no gather on TPU) ----
    # Precondition: 0 <= label < C (torch would raise; here picked=0 silently).
    onehot = class_ids == labels                                 # (B, C) bool
    picked = jnp.sum(jnp.where(onehot, logits, 0.0),
                     axis=-1, keepdims=True)                     # (B, 1)

    out_ref[0] = jnp.sum(lse - picked) * inv_b                   # 'mean' reduction

    # --- in-kernel argmax (first-max tie-break), int32 throughout ------------
    is_max = logits == m                                         # (B, C) bool
    pred = jnp.min(jnp.where(is_max, class_ids, C),
                   axis=-1, keepdims=True)                       # (B, 1) int32
    correct = (pred == labels).astype(jnp.float32)               # (B, 1)
    out_ref[1] = jnp.sum(correct) * inv_b


# ---------------------------------------------------------------------------
# Wrappers
# ---------------------------------------------------------------------------
def fewshot_loss_and_accuracy(logits, labels):
    """Fused equivalent of FewShotREModel.loss + accuracy(argmax(logits), label).

    Returns (loss, accuracy) scalars from a single pallas_call.
    """
    C = logits.shape[-1]
    logits2d = logits.reshape(-1, C)                             # (B, C), contiguous reshape
    labels2d = labels.reshape(-1, 1).astype(jnp.int32)           # (B, 1)
    out = pl.pallas_call(
        _fused_loss_acc_kernel,
        out_shape=jax.ShapeDtypeStruct((2,), jnp.float32),
        in_specs=[pl.BlockSpec(memory_space=pltpu.MemorySpace.VMEM),
                  pl.BlockSpec(memory_space=pltpu.MemorySpace.VMEM)],
        out_specs=pl.BlockSpec(memory_space=pltpu.MemorySpace.SMEM),
    )(logits2d, labels2d)
    return out[0], out[1]


def fewshot_loss(logits, labels):
    """Equivalent of FewShotREModel.loss / my_loss:
       nn.CrossEntropyLoss()(logits.view(-1, N), label.view(-1)).
       (Accuracy comes out of the same fused kernel for free.)"""
    loss, _ = fewshot_loss_and_accuracy(logits, labels)
    return loss


def fewshot_accuracy(pred, labels):
    """Equivalent of FewShotREModel.accuracy(pred, label) for an external pred.

    Plain jnp on purpose: a ~15-element int compare in a dedicated pallas_call
    is pure dispatch overhead; XLA fuses this into the surrounding graph.
    """
    return jnp.mean((pred.reshape(-1) == labels.reshape(-1)).astype(jnp.float32))


# TODO(synk): FewShotREModel.forward(support, query, N, K, Q) raises
# NotImplementedError (the sentence encoder / episode head live in subclasses),
# so no Pallas forward kernel is emitted; likewise self.bce_loss is unused in
# this class.


if __name__ == "__main__":
    # Few-shot episode sizes: N classes, Q query instances per class.
    N, K, Q = 5, 1, 3
    B = N * Q  # total number of query examples / rows of logits

    key = jax.random.PRNGKey(0)
    k_logits, k_labels = jax.random.split(key)
    logits = jax.random.normal(k_logits, (B, N), dtype=jnp.float32)
    labels = jax.random.randint(k_labels, (B,), 0, N, dtype=jnp.int32)

    # fused path: loss + in-kernel argmax + accuracy in one launch
    loss, acc = fewshot_loss_and_accuracy(logits, labels)
    loss = jax.block_until_ready(loss)
    acc = jax.block_until_ready(acc)

    # module-API-parity path: accuracy(pred, label) with an externally given pred
    pred = jnp.argmax(logits, axis=-1).astype(jnp.int32)
    acc_ext = jax.block_until_ready(fewshot_accuracy(pred, labels))

    # sanity check against pure-JAX references of nn.CrossEntropyLoss / accuracy
    ref_loss = jnp.mean(
        jax.nn.logsumexp(logits, axis=-1)
        - jnp.take_along_axis(logits, labels[:, None], axis=-1)[:, 0]
    )
    ref_acc = jnp.mean((pred == labels).astype(jnp.float32))

    assert jnp.allclose(loss, ref_loss, atol=1e-5), (loss, ref_loss)
    assert jnp.allclose(acc, ref_acc, atol=1e-6), (acc, ref_acc)
    assert jnp.allclose(acc_ext, ref_acc, atol=1e-6), (acc_ext, ref_acc)

    print("KERNEL_OK")
</pallas_src>

<mosaic_0001>
module attributes {stable_mosaic.version = 11 : i64} {
  func.func @_fused_loss_acc_kernel(%arg0: memref<15x5xf32, #tpu.memory_space<vmem>>, %arg1: memref<15x1xi32, #tpu.memory_space<vmem>>, %arg2: memref<2xf32, #tpu.memory_space<smem>>) attributes {dimension_semantics = [], scalar_prefetch = 0 : i64, scratch_operands = 0 : i64, tpu.core_type = #tpu.core_type<tc>} {
    %c0 = arith.constant 0 : index
    %c0_0 = arith.constant 0 : index
    %0 = vector.load %arg0[%c0, %c0_0] : memref<15x5xf32, #tpu.memory_space<vmem>>, vector<15x5xf32>
    %c0_1 = arith.constant 0 : index
    %c0_2 = arith.constant 0 : index
    %1 = vector.load %arg1[%c0_1, %c0_2] : memref<15x1xi32, #tpu.memory_space<vmem>>, vector<15x1xi32>
    %2 = tpu.iota {dimensions = array<i32: 1>} : vector<15x5xi32>
    %cst = arith.constant dense<0xFF800000> : vector<15xf32>
    %3 = vector.multi_reduction <maximumf>, %0, %cst [1] : vector<15x5xf32> to vector<15xf32>
    %4 = vector.shape_cast %3 : vector<15xf32> to vector<15x1xf32>
    %5 = vector.broadcast %4 : vector<15x1xf32> to vector<15x5xf32>
    %6 = arith.subf %0, %5 : vector<15x5xf32>
    %7 = math.exp %6 : vector<15x5xf32>
    %cst_3 = arith.constant dense<0.000000e+00> : vector<15xf32>
    %8 = vector.multi_reduction <add>, %7, %cst_3 [1] : vector<15x5xf32> to vector<15xf32>
    %9 = vector.shape_cast %8 : vector<15xf32> to vector<15x1xf32>
    %10 = math.log %9 : vector<15x1xf32>
    %11 = arith.addf %4, %10 : vector<15x1xf32>
    %12 = vector.broadcast %1 : vector<15x1xi32> to vector<15x5xi32>
    %13 = arith.cmpi eq, %2, %12 : vector<15x5xi32>
    %cst_4 = arith.constant 0.000000e+00 : f32
    %14 = vector.broadcast %cst_4 : f32 to vector<15x5xf32>
    %15 = arith.select %13, %0, %14 : vector<15x5xi1>, vector<15x5xf32>
    %cst_5 = arith.constant dense<0.000000e+00> : vector<15xf32>
    %16 = vector.multi_reduction <add>, %15, %cst_5 [1] : vector<15x5xf32> to vector<15xf32>
    %17 = vector.shape_cast %16 : vector<15xf32> to vector<15x1xf32>
    %18 = arith.subf %11, %17 : vector<15x1xf32>
    %19 = vector.shape_cast %18 : vector<15x1xf32> to vector<1x15x1xf32>
    %cst_6 = arith.constant dense<0.000000e+00> : vector<1xf32>
    %20 = vector.multi_reduction <add>, %19, %cst_6 [1, 2] : vector<1x15x1xf32> to vector<1xf32>
    %21 = vector.shape_cast %20 : vector<1xf32> to vector<1x1x1xf32>
    %22 = vector.extract %21[0, 0, 0] : f32 from vector<1x1x1xf32>
    %cst_7 = arith.constant 0.0666666701 : f32
    %23 = arith.mulf %22, %cst_7 : f32
    %c0_8 = arith.constant 0 : index
    %24 = memref.load %arg2[%c0_8] : memref<2xf32, #tpu.memory_space<smem>>
    memref.store %23, %arg2[%c0_8] : memref<2xf32, #tpu.memory_space<smem>>
    %25 = vector.broadcast %4 : vector<15x1xf32> to vector<15x5xf32>
    %26 = arith.cmpf oeq, %0, %25 : vector<15x5xf32>
    %c5_i32 = arith.constant 5 : i32
    %27 = vector.broadcast %c5_i32 : i32 to vector<15x5xi32>
    %28 = arith.select %26, %2, %27 : vector<15x5xi1>, vector<15x5xi32>
    %cst_9 = arith.constant dense<2147483647> : vector<15xi32>
    %29 = vector.multi_reduction <minsi>, %28, %cst_9 [1] : vector<15x5xi32> to vector<15xi32>
    %30 = vector.shape_cast %29 : vector<15xi32> to vector<15x1xi32>
    %31 = arith.cmpi eq, %30, %1 : vector<15x1xi32>
    %32 = arith.extui %31 : vector<15x1xi1> to vector<15x1xi32>
    %33 = arith.sitofp %32 : vector<15x1xi32> to vector<15x1xf32>
    %34 = vector.shape_cast %33 : vector<15x1xf32> to vector<1x15x1xf32>
    %cst_10 = arith.constant dense<0.000000e+00> : vector<1xf32>
    %35 = vector.multi_reduction <add>, %34, %cst_10 [1, 2] : vector<1x15x1xf32> to vector<1xf32>
    %36 = vector.shape_cast %35 : vector<1xf32> to vector<1x1x1xf32>
    %37 = vector.extract %36[0, 0, 0] : f32 from vector<1x1x1xf32>
    %cst_11 = arith.constant 0.0666666701 : f32
    %38 = arith.mulf %37, %cst_11 : f32
    %c1 = arith.constant 1 : index
    %39 = memref.load %arg2[%c1] : memref<2xf32, #tpu.memory_space<smem>>
    memref.store %38, %arg2[%c1] : memref<2xf32, #tpu.memory_space<smem>>
    return
  }
}

</mosaic_0001>

<bundles_post_ra>
// kernel: tpu_custom_call.1
= control target key start
LH: loop header
LB: loop body
LE: loop exit
PB: predicated region body
PF: predicated region fallthrough
CT: control target
= control target key end

     0   :  { %vm18_vm0 = vcmask 39936   ;;  %vm22_vm1 = vcmask 38912   ;;  %v178_v3 = vmov 0   ;;  %s242_s0 = inlined_call_operand.vmem [shape: f32[15,5], index: 0, kind: input, shape index: {}]   ;;  %s243_s1 = inlined_call_operand.vmem [shape: s32[15,1], index: 1, kind: input, shape index: {}]   ;;  %s244_s2 = inlined_call_operand.hbm [shape: f32[2], index: 2, kind: output, shape index: {}]  }
   0x1   :  { %v12_v0 = vld [vmem:[%s242_s0] sm:$0xff]  ;;  %v13_v1 = vld [vmem:[%s242_s0 + $0x8] sm:$0x7f]  ;;  %156 = vset.pattern.permute.xlu0 %v178_v3  ;;  %157 = vset.pattern.permute.xlu1 %v178_v3 }
   0x2   :  { %v19_v2 = vsel %vm18_vm0, %v12_v0, -inf }
   0x3   :  { %7 = vsyncpa [#allocation3], 0  ;;  %20 = vmax.xlane.f32.xlu0 %v19_v2  ;;  %v23_v4 = vsel %vm22_vm1, %v13_v1, -inf  ;;  %v207_v5 = vld [vmem:[%s243_s1] sm:$0xff]  ;;  %v16_v6 = vlaneseq  ;;  %v15_v22 = vld [vmem:[%s243_s1 + $0x8] sm:$0x7f] }
   0x4   :  { %vm64_vm9 = vcmask 6144   ;;  %v179_v61 = vmov 0.0   ;;  %vm62_vm10 = vcmask 7168   ;;  %s166_s21 = scalar_lea.hbm %s244_s2, 16 }
   0x5   :  { %v17_v7 = vand.u32 127, %v16_v6  ;;  %p167_p0 = scmp.ne.s32.totalorder %s244_s2, %s166_s21  ;;  %p170_p1 = scmp.lt.u32.totalorder %s166_s21, %s244_s2 }
   0x7   :  { %24 = vmax.xlane.f32.xlu0 %v23_v4  ;;  %p172_p2 = pnand %p170_p1, %p167_p0 }
  0x1d   :  { %45 = vperm.xlu0 %156, %v207_v5  }
  0x90   :  { %v210_v8 = vpop.xlane.xlu0 %20 }
  0x91   :  { %vm79_vm2 = vcmp.eq.f32.partialorder %v12_v0, %v210_v8  ;;  %v26_v23 = vsub.f32 %v12_v0, %v210_v8 }
  0x92   :  { %v81_v9 = vsel %vm79_vm2, %v17_v7, 5 }
  0x93   :  { %v83_v10 = vsel %vm18_vm0, %v81_v9, 2147483647  ;;  %v28_v24 = vmul.f32 1.442695, %v26_v23 }
  0x94   :  { %v214_v11 = vpop.xlane.xlu0 %24  ;;  %v85_v12 = vshra.s32 %v83_v10, 16  ;;  %v84_v30 = vand.u32 65535, %v83_v10 }
  0x95   :  { %v27_v13 = vsub.f32 %v13_v1, %v214_v11  ;;  %vm80_vm3 = vcmp.eq.f32.partialorder %v13_v1, %v214_v11 }
  0x96   :  { %v87_v14 = vcvt.s32.f32 %v85_v12  ;;  %v82_v15 = vsel %vm80_vm3, %v17_v7, 5  ;;  %v86_v32 = vcvt.s32.f32 %v84_v30 }
  0x97   :  { %v30_v16 = vmul.f32 1.442695, %v27_v13  ;;  %v98_v17 = vsel %vm22_vm1, %v82_v15, 2147483647 }
  0x98   :  { %88 = vmin.xlane.f32.xlu1 %v87_v14  ;;  %v100_v18 = vshra.s32 %v98_v17, 16  ;;  %v99_v33 = vand.u32 65535, %v98_v17 }
  0x99   :  { %158 = vpow2.f32 %v30_v16 }
  0x9a   :  { %v102_v19 = vcvt.s32.f32 %v100_v18  ;;  %160 = vpow2.f32 %v28_v24  ;;  %v101_v36 = vcvt.s32.f32 %v99_v33 }
  0x9c   :  { %103 = vmin.xlane.f32.xlu1 %v102_v19  ;;  %v46_v25 = vpop.permute.xlu0 %45 }
  0x9d   :  { %vm50_vm4 = vcmp.eq.s32.totalorder %v17_v7, %v46_v25 }
  0x9e   :  { %v52_v27 = vsel %vm50_vm4, %v12_v0, 0.0 }
  0x9f   :  { %v54_v29 = vsel %vm18_vm0, %v52_v27, 0.0 }
  0xa3   :  { %v159_v20 = vpop.eup %158 }
  0xa4   :  { %v35_v21 = vsel %vm22_vm1, %v159_v20, 0.0  ;;  %v161_v26 = vpop.eup %160 }
  0xa5   :  { %36 = vadd.xlane.f32.xlu0 %v35_v21  ;;  %v32_v28 = vsel %vm18_vm0, %v161_v26, 0.0 }
  0xad   :  { %48 = vperm.xlu1 %157, %v15_v22  }
  0xd1   :  { %33 = vadd.xlane.f32.xlu1 %v32_v28 }
  0xd5   :  { %55 = vadd.xlane.f32.xlu1 %v54_v29 }
 0x125   :  { %v89_v31 = vpop.xlane.xlu1 %88 }
 0x126   :  { %vm90_vm5 = vcmp.eq.f32.partialorder %v87_v14, %v89_v31  ;;  %v95_v45 = vcvt.f32.s32 %v89_v31 }
 0x127   :  { %v91_v34 = vsel %vm90_vm5, %v86_v32, inf }
 0x128   :  { %92 = vmin.xlane.f32.xlu1 %v91_v34  ;;  %v96_v49 = vshll.u32 %v95_v45, 16 }
 0x129   :  { %v104_v35 = vpop.xlane.xlu1 %103 }
 0x12a   :  { %vm105_vm6 = vcmp.eq.f32.partialorder %v102_v19, %v104_v35  ;;  %v110_v50 = vcvt.f32.s32 %v104_v35 }
 0x12b   :  { %v106_v37 = vsel %vm105_vm6, %v101_v36, inf }
 0x12c   :  { %107 = vmin.xlane.f32.xlu1 %v106_v37  ;;  %v111_v56 = vshll.u32 %v110_v50, 16 }
 0x12d   :  { %v49_v38 = vpop.permute.xlu1 %48 }
 0x12e   :  { %vm51_vm7 = vcmp.eq.s32.totalorder %v17_v7, %v49_v38 }
 0x12f   :  { %v53_v39 = vsel %vm51_vm7, %v13_v1, 0.0 }
 0x130   :  { %v57_v40 = vsel %vm22_vm1, %v53_v39, 0.0 }
 0x131   :  { %58 = vadd.xlane.f32.xlu1 %v57_v40 }
 0x132   :  { %v37_v42 = vpop.xlane.xlu0 %36 }
 0x15e   :  { %v34_v41 = vpop.xlane.xlu1 %33 }
 0x15f   :  { %162 = vlog2.f32 %v34_v41 }
 0x160   :  { %164 = vlog2.f32 %v37_v42 }
 0x162   :  { %v56_v43 = vpop.xlane.xlu1 %55 }
 0x169   :  { %v163_v44 = vpop.eup %162 }
 0x16a   :  { %v39_v46 = vmul.f32 0.6931472, %v163_v44  ;;  %v165_v48 = vpop.eup %164 }
 0x16b   :  { %v41_v53 = vmul.f32 0.6931472, %v165_v48 }
 0x16c   :  { %v42_v54 = vadd.f32 %v39_v46, %v210_v8 }
 0x16d   :  { %v43_v60 = vadd.f32 %v41_v53, %v214_v11 }
 0x16e   :  { %v60_v59 = vsub.f32 %v42_v54, %v56_v43 }
 0x170   :  { %v63_v4 = vsel %vm62_vm10, %v60_v59, 0.0 }
 0x1b5   :  { %v93_v47 = vpop.xlane.xlu1 %92 }
 0x1b6   :  { %v94_v51 = vcvt.f32.s32 %v93_v47 }
 0x1b8   :  { %v97_v52 = vadd.s32 %v96_v49, %v94_v51 }
 0x1b9   :  { %v108_v55 = vpop.xlane.xlu1 %107 }
 0x1ba   :  { %v109_v57 = vcvt.f32.s32 %v108_v55  ;;  %vm113_vm8 = vcmp.eq.s32.totalorder %v97_v52, %v207_v5 }
 0x1bb   :  { %v147_v62 = vsel %vm113_vm8, 1.0, %v179_v61 }
 0x1bc   :  { %v112_v58 = vadd.s32 %v111_v56, %v109_v57  ;;  %v119_v2 = vsel %vm62_vm10, %v147_v62, 0.0 }
 0x1be   :  { %v59_v63 = vpop.xlane.xlu1 %58  ;;  %vm114_vm11 = vcmp.eq.s32.totalorder %v112_v58, %v15_v22 }
 0x1bf   :  { %v61_v0 = vsub.f32 %v43_v60, %v59_v63  ;;  %v148_v1 = vsel %vm114_vm11, 1.0, %v179_v61 }
 0x1c0   :  { %v120_v3 = vsel %vm64_vm9, %v148_v1, 0.0 }
 0x1c1   :  { %v65_v6 = vsel %vm64_vm9, %v61_v0, 0.0  ;;  %v121_v7 = vadd.f32 %v120_v3, %v119_v2 }
 0x1c2   :  { %v66_v8 = vadd.f32 %v65_v6, %v63_v4 }
 0x1c4   :  { %67 = vadd.xlane.f32.xlu1 %v66_v8 }
 0x1c8   :  { %122 = vadd.xlane.f32.xlu1 %v121_v7 }
 0x251   :  { %v68_v5 = vpop.xlane.xlu1 %67 }
 0x252   :  { %v69_v9 = vrot.slane %v68_v5, 4 }
 0x254   :  { %v70_v10 = vadd.f32 %v69_v9, %v68_v5 }
 0x255   :  { %v123_v11 = vpop.xlane.xlu1 %122 }
 0x256   :  { %v71_v12 = vrot.slane %v70_v10, 2  ;;  %v124_v13 = vrot.slane %v123_v11, 4 }
 0x258   :  { %v125_v14 = vadd.f32 %v124_v13, %v123_v11  ;;  %v72_v15 = vadd.f32 %v71_v12, %v70_v10 }
 0x25a   :  { %v126_v16 = vrot.slane %v125_v14, 2  ;;  %v73_v17 = vrot.slane %v72_v15, 1 }
 0x25c   :  { %v127_v18 = vadd.f32 %v126_v16, %v125_v14  ;;  %v74_v19 = vadd.f32 %v73_v17, %v72_v15 }
 0x25e   :  { %149 = vpush %v74_v19  ;;  %v128_v20 = vrot.slane %v127_v18, 1 }
 0x260   :  { %v129_v21 = vadd.f32 %v128_v20, %v127_v18 }
 0x262   :  { %151 = vpush %v129_v21 }
 0x28f   :  { %s150_s1 = spop %149 }
 0x290   :  { %s76_s16 = smul.f32 0.06666667, %s150_s1 }
 0x292   :  { %78 = sst [smem:[#allocation2]] %s76_s16 }
 0x293   :  { %s152_s17 = spop %151 }
 0x294   :  { %s131_s18 = smul.f32 0.06666667, %s152_s17 }
 0x296   :  { %133 = sst [smem:[#allocation2 + $0x1]] %s131_s18 }
 0x297   :  { %175 = shalt.err (!%p172_p2)
}
 0x298   :  { %s180_s26 = smov [#allocation2]  }
 0x299   :  { %141 = dma.smem_to_hbm %s180_s26, 16, %s244_s2, [#allocation3]  }
 0x29a   :  { %176 = dma.done.wait [#allocation3], 16  }
 0x29b   :  { %177 = vsyncadd [#allocation3], 4294967280 }
 0x29c   :  { %145 = sfence }
 0x29d   :  { %146 = vsyncpa [#allocation3], 1 }

</bundles_post_ra>
